<compile_context>
chip_gen: v5e
topology: v5e:2x2
jax: 0.10.0
libtpu: 0.0.40
codegen_flags: <defaults>
</compile_context>

<pallas_src>
import jax
import jax.numpy as jnp
import numpy as np
from jax import lax
from jax.experimental import pallas as pl
from jax.experimental.pallas import tpu as pltpu

_NEG = -1e30  # "-inf" logit for padded categorical classes (f32-safe)


def _round_up(x, m):
    return (x + m - 1) // m * m


# --------------------- kernel 1: per-property log-likelihood -----------------

def _ll_kernel(n_valid_ref,   # SMEM (P,)          int32 (scalar prefetch)
               mu_ref,        # VMEM (P, K, D_pad) f32   resident class means
               rand_ref,      # VMEM (P, D_pad, A) f32   resident random-effect^T
               idx_ref,       # VMEM (1, 8, N_pad) int32 rows: [annotators, annos]
               ll_ref):       # VMEM (1, K, N_pad) f32   per-property log-lik
    p = pl.program_id(0)
    D_pad = mu_ref.shape[2]
    A = rand_ref.shape[2]
    N_pad = idx_ref.shape[2]

    idx = idx_ref[0]                          # (8, N_pad)
    ann = idx[0:1, :]                         # annotator ids (padded lanes = -1)
    anno = idx[1:2, :]                        # annotation class ids (pads = 0)

    # ---- annotator random-effect gather (one-hot matmul on the MXU) ----
    # padded lanes (ann == -1) give all-zero one-hot columns -> no mask needed.
    a_iota = lax.broadcasted_iota(jnp.int32, (A, N_pad), 0)
    onehot_ann = (a_iota == ann).astype(jnp.float32)              # (A, N_pad)
    randT = jnp.dot(rand_ref[p], onehot_ann,
                    preferred_element_type=jnp.float32)           # (D_pad, N_pad)
    # center over the n_valid real annotations (padded columns are exactly 0)
    inv_n = 1.0 / jnp.maximum(n_valid_ref[p], 1).astype(jnp.float32)
    randT = randT - jnp.sum(randT, axis=1, keepdims=True) * inv_n

    # ---- streaming two-pass log-softmax over classes ----
    # only {running max, sum, selected logit, current logit} stay live.
    mu = mu_ref[p]                                                # (K, D_pad)
    m = mu[:, 0:1] + randT[0:1, :]
    for d in range(1, D_pad):
        m = jnp.maximum(m, mu[:, d:d + 1] + randT[d:d + 1, :])
    s = jnp.zeros_like(m)
    sel = jnp.zeros_like(m)
    for d in range(D_pad):
        md = mu[:, d:d + 1] + randT[d:d + 1, :]
        s = s + jnp.exp(md - m)            # padded classes: exp(-huge) == 0
        sel = sel + jnp.where(anno == d, md, 0.0)
    ll_ref[0] = sel - (jnp.log(s) + m)                            # (K, N_pad)
    # NOTE: padded lanes of ll contain finite garbage; they are never scattered
    # (items padded with -1) and are sliced off before returning to the caller.


# --------------------- kernel 2: tiled index_add_ scatter ---------------------

def _scatter_kernel(ll_ref,      # VMEM (1, K, N_TILE) f32
                    items_ref,   # VMEM (1, 1, N_TILE) int32 (padded lanes = -1)
                    tot_ref):    # VMEM (K, M_TILE)    f32   resident accumulator
    p = pl.program_id(1)
    n = pl.program_id(2)
    M_TILE = tot_ref.shape[1]
    N_TILE = items_ref.shape[2]

    @pl.when(jnp.logical_and(p == 0, n == 0))
    def _init():
        tot_ref[...] = jnp.zeros_like(tot_ref)

    # one-hot only for the current (M_TILE, N_TILE) block; padded / off-tile
    # lanes never match (items == -1 or out of tile range) -> no mask tensor.
    items_local = items_ref[0] - pl.program_id(0) * M_TILE        # (1, N_TILE)
    m_iota = lax.broadcasted_iota(jnp.int32, (M_TILE, N_TILE), 0)
    onehot = (m_iota == items_local).astype(jnp.float32)          # (M_TILE, N_TILE)

    tot_ref[...] += lax.dot_general(
        ll_ref[0], onehot,
        dimension_numbers=(((1,), (1,)), ((), ())),
        preferred_element_type=jnp.float32)                       # (K, M_TILE)


# ------------------------------ thin wrappers ---------------------------------

def compute_ll(n_valid, mu_all, rand_all, idx_all):
    P, K, D_pad = mu_all.shape
    A = rand_all.shape[-1]
    N_pad = idx_all.shape[-1]
    grid_spec = pltpu.PrefetchScalarGridSpec(
        num_scalar_prefetch=1,
        grid=(P,),
        in_specs=[
            pl.BlockSpec((P, K, D_pad), lambda p, nv: (0, 0, 0)),   # resident
            pl.BlockSpec((P, D_pad, A), lambda p, nv: (0, 0, 0)),   # resident
            pl.BlockSpec((1, 8, N_pad), lambda p, nv: (p, 0, 0)),   # packed ints
        ],
        out_specs=pl.BlockSpec((1, K, N_pad), lambda p, nv: (p, 0, 0)),
    )
    cost = pl.CostEstimate(
        flops=int(P * (2 * D_pad * A * N_pad + 8 * D_pad * K * N_pad)),
        transcendentals=int(P * K * N_pad * (D_pad + 1)),
        bytes_accessed=int(4 * (mu_all.size + rand_all.size + idx_all.size
                                + P * K * N_pad)))
    return pl.pallas_call(
        _ll_kernel,
        grid_spec=grid_spec,
        out_shape=jax.ShapeDtypeStruct((P, K, N_pad), jnp.float32),
        compiler_params=pltpu.CompilerParams(
            dimension_semantics=("parallel",),
            vmem_limit_bytes=32 * 1024 * 1024),
        cost_estimate=cost,
    )(n_valid, mu_all, rand_all, idx_all)


def scatter_items(ll_all, items_all, m_pad, m_tile, n_tile):
    P, K, N_pad = ll_all.shape
    m_tiles = m_pad // m_tile
    n_tiles = N_pad // n_tile
    grid_spec = pltpu.PrefetchScalarGridSpec(
        num_scalar_prefetch=0,
        grid=(m_tiles, P, n_tiles),
        in_specs=[
            pl.BlockSpec((1, K, n_tile), lambda m, p, n: (p, 0, n)),
            pl.BlockSpec((1, 1, n_tile), lambda m, p, n: (p, 0, n)),
        ],
        out_specs=pl.BlockSpec((K, m_tile), lambda m, p, n: (0, m)),
    )
    cost = pl.CostEstimate(
        flops=int(2 * K * m_pad * N_pad * P),
        transcendentals=0,
        bytes_accessed=int(4 * (m_tiles * (ll_all.size + items_all.size)
                                + K * m_pad)))
    return pl.pallas_call(
        _scatter_kernel,
        grid_spec=grid_spec,
        out_shape=jax.ShapeDtypeStruct((K, m_pad), jnp.float32),
        compiler_params=pltpu.CompilerParams(
            dimension_semantics=("parallel", "arbitrary", "arbitrary"),
            vmem_limit_bytes=32 * 1024 * 1024),
        cost_estimate=cost,
    )(ll_all, items_all)


# --------------------- module equivalent (forward pass) ----------------------

class SemanticsEdgeAnnotationLikelihoodPallas:
    """Pallas port of SemanticsEdgeAnnotationLikelihood (semantics-edge /
    protoroles subspace). Random effects mirror
    Parameter(torch.randn(num_annotators, prop_dim) * 0.1)."""

    def __init__(self, prop_dims, num_annotators, n_components, key):
        self.n_components = n_components
        self.num_annotators = num_annotators
        self.prop_dims = dict(prop_dims)
        self.random_effects = {}
        for i, (p, d) in enumerate(sorted(prop_dims.items())):
            k = jax.random.fold_in(key, i)
            self.random_effects[p] = 0.1 * jax.random.normal(
                k, (num_annotators, d), dtype=jnp.float32)

        # Pre-pack padded/transposed random-effect tables for the kernels.
        # Bernoulli (D=1) becomes a 2-class categorical with logits [0, mu+r].
        self._d_eff = {p: (2 if d == 1 else d) for p, d in self.prop_dims.items()}
        self._d_pad = max(self._d_eff.values())
        self._randT_padded = {}
        for p, d in self.prop_dims.items():
            R = self.random_effects[p]                               # (A, D)
            if d == 1:
                R = jnp.concatenate([jnp.zeros_like(R), R], axis=-1)  # [0, r]
            R = jnp.pad(R, ((0, 0), (0, self._d_pad - R.shape[-1])))  # 0 for pads
            self._randT_padded[p] = R.T                              # (D_pad, A)

    def forward(self, mus, annotations, items, annotators, confidences=None,
                num_items=None):
        # confidences unused with default flags (kept for signature parity)
        del confidences
        K = self.n_components
        props = list(annotations.keys())
        n_per = [int(annotations[p].shape[0]) for p in props]

        n_pad = _round_up(max(n_per), 128)
        n_tile = n_pad if n_pad <= 512 else 512
        n_pad = _round_up(n_pad, n_tile)
        m_pad = _round_up(max(int(num_items), 1), 128)
        m_tile = m_pad if m_pad <= 512 else 512
        m_pad = _round_up(m_pad, m_tile)

        mu_list, rand_list, idx_list, items_list = [], [], [], []
        for p in props:
            mu = mus[p].astype(jnp.float32)                          # (K, D)
            if self.prop_dims[p] == 1:
                mu = jnp.concatenate([jnp.zeros((K, 1), jnp.float32), mu],
                                     axis=-1)                        # [0, mu]
            mu = jnp.pad(mu, ((0, 0), (0, self._d_pad - mu.shape[-1])),
                         constant_values=_NEG)                       # dead classes
            mu_list.append(mu)
            rand_list.append(self._randT_padded[p])

            n = int(annotations[p].shape[0])
            pad = (0, n_pad - n)
            ann = jnp.pad(annotators[p].astype(jnp.int32), pad,
                          constant_values=-1)                        # never matches
            anno = jnp.pad(annotations[p].astype(jnp.int32), pad)
            itm = jnp.pad(items[p].astype(jnp.int32), pad,
                          constant_values=-1)                        # never matches
            packed = jnp.zeros((8, n_pad), jnp.int32).at[0].set(ann).at[1].set(anno)
            idx_list.append(packed)
            items_list.append(itm[None, :])

        mu_all = jnp.stack(mu_list)                                  # (P, K, D_pad)
        rand_all = jnp.stack(rand_list)                              # (P, D_pad, A)
        idx_all = jnp.stack(idx_list)                                # (P, 8, N_pad)
        items_all = jnp.stack(items_list)                            # (P, 1, N_pad)
        n_valid = jnp.asarray(n_per, dtype=jnp.int32)                # (P,)

        ll_all = compute_ll(n_valid, mu_all, rand_all, idx_all)      # (P, K, N_pad)
        tot = scatter_items(ll_all, items_all, m_pad, m_tile, n_tile)  # (K, M_pad)

        likelihoods = {p: ll_all[i, :, :n_per[i]] for i, p in enumerate(props)}
        total_ll = tot[:, :num_items]
        return likelihoods, total_ll
        # TODO(synk): use_ordinal / clip_min_ll / confidence_weighting and the
        # dev_annotators_in_train branches are not exercised here (defaults off).


# ------------------------------ pure-JAX ref ---------------------------------

def _reference_forward(mus, random_effects, annotations, items, annotators,
                       num_items, K):
    lks = {}
    total = jnp.zeros((K, num_items), dtype=jnp.float32)
    for p, anno in annotations.items():
        mu = mus[p][:, None, :]                          # (K, 1, D)
        r = random_effects[p][annotators[p]]             # (N, D)
        r = (r - r.mean(0))[None]                        # (1, N, D)
        mean = mu + r                                    # (K, N, D)
        if mu.shape[-1] == 1:
            logit = mean[..., 0]
            a = anno[None, :].astype(jnp.float32)
            ll = a * jax.nn.log_sigmoid(logit) + (1 - a) * jax.nn.log_sigmoid(-logit)
        else:
            logp = jax.nn.log_softmax(mean, axis=-1)
            idx = jnp.broadcast_to(anno[None, :, None].astype(jnp.int32),
                                   (K, anno.shape[0], 1))
            ll = jnp.take_along_axis(logp, idx, axis=-1)[..., 0]
        lks[p] = ll
        total = total.at[:, items[p]].add(ll)            # index_add_
    return lks, total


# ---------------------------------- main -------------------------------------

if __name__ == "__main__":
    key = jax.random.PRNGKey(0)
    K = 4               # n_components
    num_annotators = 10
    N = 64              # annotations per property
    M = 16              # num_items
    # semantics-edge (protoroles) properties: two categorical, one binary
    prop_dims = {
        "protoroles-awareness": 5,
        "protoroles-volition": 5,
        "protoroles-instigation": 1,
    }

    mod = SemanticsEdgeAnnotationLikelihoodPallas(
        prop_dims, num_annotators, K, jax.random.fold_in(key, 100))

    mus, annotations, items, annotators, confidences = {}, {}, {}, {}, {}
    for i, (p, d) in enumerate(sorted(prop_dims.items())):
        kk = jax.random.fold_in(key, i)
        k1, k2, k3, k4, k5 = jax.random.split(kk, 5)
        mus[p] = jax.random.normal(k1, (K, d), dtype=jnp.float32)
        if d == 1:
            annotations[p] = jax.random.bernoulli(k2, 0.5, (N,)).astype(jnp.float32)
        else:
            annotations[p] = jax.random.randint(k2, (N,), 0, d, dtype=jnp.int32)
        items[p] = jax.random.randint(k3, (N,), 0, M, dtype=jnp.int32)
        annotators[p] = jax.random.randint(k4, (N,), 0, num_annotators,
                                           dtype=jnp.int32)
        confidences[p] = jax.random.uniform(k5, (N,), dtype=jnp.float32)

    likelihoods, total_ll = mod.forward(mus, annotations, items, annotators,
                                        confidences, num_items=M)
    jax.block_until_ready(total_ll)

    # correctness check against a pure-JAX reference of the PyTorch forward
    ref_lks, ref_total = _reference_forward(
        mus, mod.random_effects, annotations, items, annotators, M, K)
    for p in annotations:
        np.testing.assert_allclose(np.asarray(likelihoods[p]),
                                   np.asarray(ref_lks[p]),
                                   rtol=1e-4, atol=1e-4)
    np.testing.assert_allclose(np.asarray(total_ll), np.asarray(ref_total),
                               rtol=1e-4, atol=1e-4)
    print("KERNEL_OK")
</pallas_src>

<mosaic_0001>
module attributes {stable_mosaic.version = 11 : i64} {
  func.func @_ll_kernel(%arg0: i32, %arg1: memref<3xi32, #tpu.memory_space<smem>>, %arg2: memref<3x4x5xf32, #tpu.memory_space<vmem>>, %arg3: memref<3x5x10xf32, #tpu.memory_space<vmem>>, %arg4: memref<1x8x128xi32, #tpu.memory_space<vmem>>, %arg5: memref<1x4x128xf32, #tpu.memory_space<vmem>>) attributes {dimension_semantics = [#tpu.dimension_semantics<parallel>], iteration_bounds = array<i64: 3>, scalar_prefetch = 1 : i64, scratch_operands = 0 : i64, tpu.core_type = #tpu.core_type<tc>, window_params = [{pipeline_mode = #tpu.pipeline_mode<synchronous>, transform_indices = @transform_0, window_bounds = array<i64: 3, 4, 5>}, {pipeline_mode = #tpu.pipeline_mode<synchronous>, transform_indices = @transform_1, window_bounds = array<i64: 3, 5, 10>}, {transform_indices = @transform_2, window_bounds = array<i64: 1, 8, 128>}, {transform_indices = @transform_3, window_bounds = array<i64: 1, 4, 128>}]} {
    %c0 = arith.constant 0 : index
    %c0_0 = arith.constant 0 : index
    %c0_1 = arith.constant 0 : index
    %0 = vector.load %arg4[%c0, %c0_0, %c0_1] : memref<1x8x128xi32, #tpu.memory_space<vmem>>, vector<1x8x128xi32>
    %1 = vector.shape_cast %0 : vector<1x8x128xi32> to vector<8x128xi32>
    %2 = vector.extract_strided_slice %1 {offsets = [0, 0], sizes = [1, 128], strides = [1, 1]} : vector<8x128xi32> to vector<1x128xi32>
    %3 = vector.extract_strided_slice %1 {offsets = [1, 0], sizes = [1, 128], strides = [1, 1]} : vector<8x128xi32> to vector<1x128xi32>
    %4 = tpu.iota {dimensions = array<i32: 0>} : vector<10x128xi32>
    %5 = vector.broadcast %2 : vector<1x128xi32> to vector<10x128xi32>
    %6 = arith.cmpi eq, %4, %5 : vector<10x128xi32>
    %7 = arith.extui %6 : vector<10x128xi1> to vector<10x128xi32>
    %8 = arith.sitofp %7 : vector<10x128xi32> to vector<10x128xf32>
    %9 = arith.index_cast %arg0 : i32 to index
    %c0_2 = arith.constant 0 : index
    %c0_3 = arith.constant 0 : index
    %10 = vector.load %arg3[%9, %c0_2, %c0_3] : memref<3x5x10xf32, #tpu.memory_space<vmem>>, vector<1x5x10xf32>
    %11 = vector.shape_cast %10 : vector<1x5x10xf32> to vector<5x10xf32>
    %cst = arith.constant dense<0.000000e+00> : vector<5x128xf32>
    %12 = tpu.matmul %11, %8, %cst {dimension_numbers = #tpu.dot_dimension_numbers<[1], [0], [0], [1], [0, 0, 1, 1], [], []>} : vector<5x10xf32>, vector<10x128xf32>, vector<5x128xf32> -> vector<5x128xf32>
    %13 = arith.index_cast %arg0 : i32 to index
    %14 = memref.load %arg1[%13] : memref<3xi32, #tpu.memory_space<smem>>
    %c1_i32 = arith.constant 1 : i32
    %15 = arith.maxsi %14, %c1_i32 : i32
    %16 = arith.sitofp %15 : i32 to f32
    %cst_4 = arith.constant 1.000000e+00 : f32
    %17 = arith.divf %cst_4, %16 : f32
    %cst_5 = arith.constant dense<0.000000e+00> : vector<5xf32>
    %18 = vector.multi_reduction <add>, %12, %cst_5 [1] : vector<5x128xf32> to vector<5xf32>
    %19 = vector.shape_cast %18 : vector<5xf32> to vector<5x1xf32>
    %20 = vector.broadcast %17 : f32 to vector<5x1xf32>
    %21 = arith.mulf %19, %20 : vector<5x1xf32>
    %22 = vector.broadcast %21 : vector<5x1xf32> to vector<5x128xf32>
    %23 = arith.subf %12, %22 : vector<5x128xf32>
    %24 = arith.index_cast %arg0 : i32 to index
    %c0_6 = arith.constant 0 : index
    %c0_7 = arith.constant 0 : index
    %25 = vector.load %arg2[%24, %c0_6, %c0_7] : memref<3x4x5xf32, #tpu.memory_space<vmem>>, vector<1x4x5xf32>
    %26 = vector.shape_cast %25 : vector<1x4x5xf32> to vector<4x5xf32>
    %27 = vector.extract_strided_slice %26 {offsets = [0, 0], sizes = [4, 1], strides = [1, 1]} : vector<4x5xf32> to vector<4x1xf32>
    %28 = vector.extract_strided_slice %23 {offsets = [0, 0], sizes = [1, 128], strides = [1, 1]} : vector<5x128xf32> to vector<1x128xf32>
    %29 = vector.broadcast %27 : vector<4x1xf32> to vector<4x128xf32>
    %30 = vector.broadcast %28 : vector<1x128xf32> to vector<4x128xf32>
    %31 = arith.addf %29, %30 : vector<4x128xf32>
    %32 = vector.extract_strided_slice %26 {offsets = [0, 1], sizes = [4, 1], strides = [1, 1]} : vector<4x5xf32> to vector<4x1xf32>
    %33 = vector.extract_strided_slice %23 {offsets = [1, 0], sizes = [1, 128], strides = [1, 1]} : vector<5x128xf32> to vector<1x128xf32>
    %34 = vector.broadcast %32 : vector<4x1xf32> to vector<4x128xf32>
    %35 = vector.broadcast %33 : vector<1x128xf32> to vector<4x128xf32>
    %36 = arith.addf %34, %35 : vector<4x128xf32>
    %37 = arith.maximumf %31, %36 : vector<4x128xf32>
    %38 = vector.extract_strided_slice %26 {offsets = [0, 2], sizes = [4, 1], strides = [1, 1]} : vector<4x5xf32> to vector<4x1xf32>
    %39 = vector.extract_strided_slice %23 {offsets = [2, 0], sizes = [1, 128], strides = [1, 1]} : vector<5x128xf32> to vector<1x128xf32>
    %40 = vector.broadcast %38 : vector<4x1xf32> to vector<4x128xf32>
    %41 = vector.broadcast %39 : vector<1x128xf32> to vector<4x128xf32>
    %42 = arith.addf %40, %41 : vector<4x128xf32>
    %43 = arith.maximumf %37, %42 : vector<4x128xf32>
    %44 = vector.extract_strided_slice %26 {offsets = [0, 3], sizes = [4, 1], strides = [1, 1]} : vector<4x5xf32> to vector<4x1xf32>
    %45 = vector.extract_strided_slice %23 {offsets = [3, 0], sizes = [1, 128], strides = [1, 1]} : vector<5x128xf32> to vector<1x128xf32>
    %46 = vector.broadcast %44 : vector<4x1xf32> to vector<4x128xf32>
    %47 = vector.broadcast %45 : vector<1x128xf32> to vector<4x128xf32>
    %48 = arith.addf %46, %47 : vector<4x128xf32>
    %49 = arith.maximumf %43, %48 : vector<4x128xf32>
    %50 = vector.extract_strided_slice %26 {offsets = [0, 4], sizes = [4, 1], strides = [1, 1]} : vector<4x5xf32> to vector<4x1xf32>
    %51 = vector.extract_strided_slice %23 {offsets = [4, 0], sizes = [1, 128], strides = [1, 1]} : vector<5x128xf32> to vector<1x128xf32>
    %52 = vector.broadcast %50 : vector<4x1xf32> to vector<4x128xf32>
    %53 = vector.broadcast %51 : vector<1x128xf32> to vector<4x128xf32>
    %54 = arith.addf %52, %53 : vector<4x128xf32>
    %55 = arith.maximumf %49, %54 : vector<4x128xf32>
    %cst_8 = arith.constant 0.000000e+00 : f32
    %56 = vector.broadcast %cst_8 : f32 to vector<4x128xf32>
    %cst_9 = arith.constant 0.000000e+00 : f32
    %57 = vector.broadcast %cst_9 : f32 to vector<4x128xf32>
    %58 = vector.extract_strided_slice %26 {offsets = [0, 0], sizes = [4, 1], strides = [1, 1]} : vector<4x5xf32> to vector<4x1xf32>
    %59 = vector.extract_strided_slice %23 {offsets = [0, 0], sizes = [1, 128], strides = [1, 1]} : vector<5x128xf32> to vector<1x128xf32>
    %60 = vector.broadcast %58 : vector<4x1xf32> to vector<4x128xf32>
    %61 = vector.broadcast %59 : vector<1x128xf32> to vector<4x128xf32>
    %62 = arith.addf %60, %61 : vector<4x128xf32>
    %63 = arith.subf %62, %55 : vector<4x128xf32>
    %64 = math.exp %63 : vector<4x128xf32>
    %65 = arith.addf %56, %64 : vector<4x128xf32>
    %c0_i32 = arith.constant 0 : i32
    %66 = vector.broadcast %c0_i32 : i32 to vector<1x128xi32>
    %67 = arith.cmpi eq, %3, %66 : vector<1x128xi32>
    %cst_10 = arith.constant 0.000000e+00 : f32
    %68 = vector.shape_cast %67 : vector<1x128xi1> to vector<1x128xi1>
    %69 = vector.broadcast %68 : vector<1x128xi1> to vector<4x128xi1>
    %70 = vector.broadcast %cst_10 : f32 to vector<4x128xf32>
    %71 = arith.select %69, %62, %70 : vector<4x128xi1>, vector<4x128xf32>
    %72 = arith.addf %57, %71 : vector<4x128xf32>
    %73 = vector.extract_strided_slice %26 {offsets = [0, 1], sizes = [4, 1], strides = [1, 1]} : vector<4x5xf32> to vector<4x1xf32>
    %74 = vector.extract_strided_slice %23 {offsets = [1, 0], sizes = [1, 128], strides = [1, 1]} : vector<5x128xf32> to vector<1x128xf32>
    %75 = vector.broadcast %73 : vector<4x1xf32> to vector<4x128xf32>
    %76 = vector.broadcast %74 : vector<1x128xf32> to vector<4x128xf32>
    %77 = arith.addf %75, %76 : vector<4x128xf32>
    %78 = arith.subf %77, %55 : vector<4x128xf32>
    %79 = math.exp %78 : vector<4x128xf32>
    %80 = arith.addf %65, %79 : vector<4x128xf32>
    %c1_i32_11 = arith.constant 1 : i32
    %81 = vector.broadcast %c1_i32_11 : i32 to vector<1x128xi32>
    %82 = arith.cmpi eq, %3, %81 : vector<1x128xi32>
    %cst_12 = arith.constant 0.000000e+00 : f32
    %83 = vector.shape_cast %82 : vector<1x128xi1> to vector<1x128xi1>
    %84 = vector.broadcast %83 : vector<1x128xi1> to vector<4x128xi1>
    %85 = vector.broadcast %cst_12 : f32 to vector<4x128xf32>
    %86 = arith.select %84, %77, %85 : vector<4x128xi1>, vector<4x128xf32>
    %87 = arith.addf %72, %86 : vector<4x128xf32>
    %88 = vector.extract_strided_slice %26 {offsets = [0, 2], sizes = [4, 1], strides = [1, 1]} : vector<4x5xf32> to vector<4x1xf32>
    %89 = vector.extract_strided_slice %23 {offsets = [2, 0], sizes = [1, 128], strides = [1, 1]} : vector<5x128xf32> to vector<1x128xf32>
    %90 = vector.broadcast %88 : vector<4x1xf32> to vector<4x128xf32>
    %91 = vector.broadcast %89 : vector<1x128xf32> to vector<4x128xf32>
    %92 = arith.addf %90, %91 : vector<4x128xf32>
    %93 = arith.subf %92, %55 : vector<4x128xf32>
    %94 = math.exp %93 : vector<4x128xf32>
    %95 = arith.addf %80, %94 : vector<4x128xf32>
    %c2_i32 = arith.constant 2 : i32
    %96 = vector.broadcast %c2_i32 : i32 to vector<1x128xi32>
    %97 = arith.cmpi eq, %3, %96 : vector<1x128xi32>
    %cst_13 = arith.constant 0.000000e+00 : f32
    %98 = vector.shape_cast %97 : vector<1x128xi1> to vector<1x128xi1>
    %99 = vector.broadcast %98 : vector<1x128xi1> to vector<4x128xi1>
    %100 = vector.broadcast %cst_13 : f32 to vector<4x128xf32>
    %101 = arith.select %99, %92, %100 : vector<4x128xi1>, vector<4x128xf32>
    %102 = arith.addf %87, %101 : vector<4x128xf32>
    %103 = vector.extract_strided_slice %26 {offsets = [0, 3], sizes = [4, 1], strides = [1, 1]} : vector<4x5xf32> to vector<4x1xf32>
    %104 = vector.extract_strided_slice %23 {offsets = [3, 0], sizes = [1, 128], strides = [1, 1]} : vector<5x128xf32> to vector<1x128xf32>
    %105 = vector.broadcast %103 : vector<4x1xf32> to vector<4x128xf32>
    %106 = vector.broadcast %104 : vector<1x128xf32> to vector<4x128xf32>
    %107 = arith.addf %105, %106 : vector<4x128xf32>
    %108 = arith.subf %107, %55 : vector<4x128xf32>
    %109 = math.exp %108 : vector<4x128xf32>
    %110 = arith.addf %95, %109 : vector<4x128xf32>
    %c3_i32 = arith.constant 3 : i32
    %111 = vector.broadcast %c3_i32 : i32 to vector<1x128xi32>
    %112 = arith.cmpi eq, %3, %111 : vector<1x128xi32>
    %cst_14 = arith.constant 0.000000e+00 : f32
    %113 = vector.shape_cast %112 : vector<1x128xi1> to vector<1x128xi1>
    %114 = vector.broadcast %113 : vector<1x128xi1> to vector<4x128xi1>
    %115 = vector.broadcast %cst_14 : f32 to vector<4x128xf32>
    %116 = arith.select %114, %107, %115 : vector<4x128xi1>, vector<4x128xf32>
    %117 = arith.addf %102, %116 : vector<4x128xf32>
    %118 = vector.extract_strided_slice %26 {offsets = [0, 4], sizes = [4, 1], strides = [1, 1]} : vector<4x5xf32> to vector<4x1xf32>
    %119 = vector.extract_strided_slice %23 {offsets = [4, 0], sizes = [1, 128], strides = [1, 1]} : vector<5x128xf32> to vector<1x128xf32>
    %120 = vector.broadcast %118 : vector<4x1xf32> to vector<4x128xf32>
    %121 = vector.broadcast %119 : vector<1x128xf32> to vector<4x128xf32>
    %122 = arith.addf %120, %121 : vector<4x128xf32>
    %123 = arith.subf %122, %55 : vector<4x128xf32>
    %124 = math.exp %123 : vector<4x128xf32>
    %125 = arith.addf %110, %124 : vector<4x128xf32>
    %c4_i32 = arith.constant 4 : i32
    %126 = vector.broadcast %c4_i32 : i32 to vector<1x128xi32>
    %127 = arith.cmpi eq, %3, %126 : vector<1x128xi32>
    %cst_15 = arith.constant 0.000000e+00 : f32
    %128 = vector.shape_cast %127 : vector<1x128xi1> to vector<1x128xi1>
    %129 = vector.broadcast %128 : vector<1x128xi1> to vector<4x128xi1>
    %130 = vector.broadcast %cst_15 : f32 to vector<4x128xf32>
    %131 = arith.select %129, %122, %130 : vector<4x128xi1>, vector<4x128xf32>
    %132 = arith.addf %117, %131 : vector<4x128xf32>
    %133 = math.log %125 : vector<4x128xf32>
    %134 = arith.addf %133, %55 : vector<4x128xf32>
    %135 = arith.subf %132, %134 : vector<4x128xf32>
    %c0_16 = arith.constant 0 : index
    %c0_17 = arith.constant 0 : index
    %c0_18 = arith.constant 0 : index
    %136 = vector.load %arg5[%c0_16, %c0_17, %c0_18] : memref<1x4x128xf32, #tpu.memory_space<vmem>>, vector<1x4x128xf32>
    %137 = vector.shape_cast %136 : vector<1x4x128xf32> to vector<4x128xf32>
    %138 = vector.shape_cast %135 : vector<4x128xf32> to vector<1x4x128xf32>
    tpu.vector_store %arg5[%c0_16, %c0_17, %c0_18], %138 {strides = array<i32>} : memref<1x4x128xf32, #tpu.memory_space<vmem>>, vector<1x4x128xf32>,
    return
  }
  func.func @transform_0(%arg0: i32, %arg1: memref<3xi32, #tpu.memory_space<smem>>) -> (i32, i32, i32) {
    %c0_i32 = arith.constant 0 : i32
    %c0_i32_0 = arith.constant 0 : i32
    %c0_i32_1 = arith.constant 0 : i32
    %c0_i32_2 = arith.constant 0 : i32
    return %c0_i32, %c0_i32_0, %c0_i32_1 : i32, i32, i32
  }
  func.func @transform_1(%arg0: i32, %arg1: memref<3xi32, #tpu.memory_space<smem>>) -> (i32, i32, i32) {
    %c0_i32 = arith.constant 0 : i32
    %c0_i32_0 = arith.constant 0 : i32
    %c0_i32_1 = arith.constant 0 : i32
    %c0_i32_2 = arith.constant 0 : i32
    return %c0_i32, %c0_i32_0, %c0_i32_1 : i32, i32, i32
  }
  func.func @transform_2(%arg0: i32, %arg1: memref<3xi32, #tpu.memory_space<smem>>) -> (i32, i32, i32) {
    %c0_i32 = arith.constant 0 : i32
    %c0_i32_0 = arith.constant 0 : i32
    %c0_i32_1 = arith.constant 0 : i32
    return %arg0, %c0_i32, %c0_i32_0 : i32, i32, i32
  }
  func.func @transform_3(%arg0: i32, %arg1: memref<3xi32, #tpu.memory_space<smem>>) -> (i32, i32, i32) {
    %c0_i32 = arith.constant 0 : i32
    %c0_i32_0 = arith.constant 0 : i32
    %c0_i32_1 = arith.constant 0 : i32
    return %arg0, %c0_i32, %c0_i32_0 : i32, i32, i32
  }
}

</mosaic_0001>

<bundles_post_ra>
// kernel: tpu_custom_call.1
= control target key start
LH: loop header
LB: loop body
LE: loop exit
PB: predicated region body
PF: predicated region fallthrough
CT: control target
= control target key end

     0   :  { %s580_s18 = smov [#allocation3]   ;;  %s746_s0 = inlined_call_operand.vmem [shape: s32[3], index: 0, kind: input, shape index: {}]   ;;  %s747_s1 = inlined_call_operand.vmem [shape: f32[3,4,5], index: 1, kind: input, shape index: {}]   ;;  %s748_s2 = inlined_call_operand.vmem [shape: f32[3,5,10], index: 2, kind: input, shape index: {}]   ;;  %s749_s3 = inlined_call_operand.vmem [shape: s32[3,8,128], index: 3, kind: input, shape index: {}]   ;;  %s750_s4 = inlined_call_operand.hbm [shape: f32[3,4,128], index: 4, kind: output, shape index: {}]  }
   0x1   :  { %s10_s17 = sshll.u32 %s746_s0, 4  ;;  %s11_s17 = int_to_ptr.vmem [resolvable:$true] %s10_s17 }
   0x2   :  { %13 = dma.vmem_to_smem %s11_s17, 16, %s580_s18, [#allocation2] }
   0x3   :  { %558 = dma.done.wait [#allocation2], 16 }
   0x4   :  { %559 = vsyncadd [#allocation2], 4294967280 }
   0x5   :  { %16 = sfence }
   0x6   :  { %17 = vsyncpa [#allocation5], 0 }
   0x7   :  { %19 = vsyncpa [#allocation5 + $0x1], 0  ;;  %s616_s19 = smov 0   ;;  %s618_s20 = smov 0  }
   0x8   :  { %s620_s21 = smov 0   ;;  %s622_s22 = smov 0  }
   0x9 LB: > { %s637_s0 = sadd.s32 4294967295, %s578_s22   ;;  %s416_s23 = sadd.s32 4294967294, %s578_s22   ;;  %s578_s22 = sphi %s622_s22, %s758_s22   ;;  %s574_s21 = sphi %s620_s21, %s757_s21   ;;  %s570_s20 = sphi %s618_s20, %s756_s20   ;;  %s566_s19 = sphi %s616_s19, %s755_s19  }
   0xa   : > { %s641_s24 = sadd.s32 1, %s578_s22   ;;  %s100_s25 = sadd.s32 1, %s574_s21 }
   0xb   : > { %s97_s26 = ssub.s32 %s578_s22, %s641_s24  ;;  %p110_p0 = scmp.ne.s32.totalorder %s574_s21, %s570_s20 }
   0xc   : > { %p98_p1 = scmp.eq.s32.totalorder %s97_s26, 0  ;;  %p111_p2 = scmp.eq.s32.totalorder %s637_s0, 2 }
   0xd   : > { %p116_p3 = scmp.ne.s32.totalorder %s570_s20, %s566_s19  ;;  %p117_p4 = scmp.eq.s32.totalorder %s416_s23, 2 }
   0xe   : > { %s652_s27 = scalar_select %p98_p1, %s574_s21, %s100_s25  }
   0xf   : > { %p654_p5 = por %p111_p2, %p110_p0  ;;  %p658_p6 = por %p117_p4, %p116_p3 }
  0x10   : > { %p419_p7 = scmp.ge.s32.totalorder %s578_s22, 1  ;;  %p148_p8 = scmp.lt.s32.totalorder %s578_s22, 4 }
  0x12   : > { %p149_p9 = pnand %p419_p7, %p148_p8 }
  0x13   : > { %p171_p10 = scmp.lt.s32.totalorder (!%p149_p9), %s637_s0, 2  ;;  %s428_s30 = sshll.u32 (!%p149_p9), %s637_s0, 2 }
  0x14   : > { %152 = sbr.rel (%p149_p9) target bundleno = 345 (0x159), region = 32  ;;  %s245_s8 = scalar_lea.vmem (!%p149_p9), %s747_s1, %s428_s30 }
  0x15   : > { %s424_s13 = sshll.u32 (!%p149_p9), %s637_s0, 3  ;;  %s217_s17 = sld [smem:[#allocation3 + %s637_s0]] (!%p149_p9) }
  0x16   : > { %s187_s16 = scalar_lea.vmem (!%p149_p9), %s748_s2, %s424_s13  ;;  %s168_s25 = sand.u32 (!%p149_p9), 1, %s570_s20  }
  0x17   : > { %s420_s26 = sshll.u32 (!%p149_p9), %s168_s25, 2  ;;  %s348_s7 = scalar_lea.hbm (!%p149_p9), %s750_s4, %s428_s30 }
  0x18   : > { %s352_s10 = sshll.u32 (!%p149_p9), %s348_s7, 4  ;;  %s534_s14 = scalar_lea.hbm (!%p149_p9), %s750_s4, 12  ;;  %s353_s10 = int_to_ptr.hbm [resolvable:$true] %s352_s10 }
  0x19   : > { %v176_v0 = vlaneseq  ;;  %s172_s5 = scalar_select %p171_p10, %s637_s0, 2  ;;  %v581_v2 = vmov 1   ;;  %v246_v3 = vld [vmem:[%s245_s8] sm:$0xf]  ;;  %vm193_vm0 = vcmask 1041408   ;;  %v582_v7 = vmov 0.0  }
  0x1a   : > { %483 = vset.pattern.permute.xlu1 %v581_v2  ;;  %v188_v9 = vld [vmem:[%s187_s16] sm:$0x1f]  ;;  %vm189_vm3 = vcmask 80896   ;;  %v583_v10 = vmov 1.0   ;;  %v584_v11 = vmov 2   ;;  %v585_v12 = vmov 0  }
  0x1b   : > { %v177_v1 = vshrl.u32 %v176_v0, 7  ;;  %s421_s9 = sshll.u32 %s172_s5, 3  ;;  %255 = vperm.xlu1 %483, %v246_v3   ;;  %482 = vset.pattern.permute.xlu0 %v585_v12  ;;  %p218_p11 = scmp.gt.s32.totalorder %s217_s17, 1  ;;  %v586_v14 = vmov 3   ;;  %vm237_vm4 = vcmask 1044480   ;;  %v587_v19 = vmov 4  }
  0x1c   : > { %s174_s12 = scalar_lea.vmem %s749_s3, %s421_s9  ;;  %485 = vset.pattern.permute.xlu2 %v586_v14  ;;  %s170_s8 = scalar_lea.vmem [#allocation4], %s420_s26 }
  0x1d   : > { %v178_v4 = vadd.s32 8, %v177_v1  ;;  %v676_v5 = vld [vmem:[%s174_s12] sm:$0xff]  ;;  %s760_s17 = smov (!%p218_p11, %s217_s17), 1  ;;  %269 = vperm.xlu2 %485, %v246_v3   ;;  %s350_s9 = sshll.u32 %s170_s8, 4  ;;  %s351_s9 = int_to_ptr.vmem [resolvable:$true] %s350_s9 }
  0x1e   : > { %v179_v6 = vperm.slane %v676_v5, 0  ;;  %s220_s18 = scvt.s32.f32 %s760_s17  ;;  %vm286_vm9 = vcmp.eq.s32.totalorder %v676_v5, 0  ;;  %vm296_vm10 = vcmp.eq.s32.totalorder %v676_v5, 1  ;;  %vm306_vm11 = vcmp.eq.s32.totalorder %v676_v5, 2  ;;  %s338_s0 = scalar_lea.sflag [#allocation5], %s168_s25 }
  0x1f   : > { %v287_v59 = vsel %vm286_vm9, 1, %v585_v12  ;;  %v297_v61 = vsel %vm296_vm10, 1, %v585_v12  ;;  %v307_v2 = vsel %vm306_vm11, 1, %v585_v12  ;;  %vm316_vm13 = vcmp.eq.s32.totalorder %v676_v5, 3  ;;  %s528_s11 = sshra.s32 %s353_s10, 4  ;;  %s529_s11 = int_to_ptr.hbm [resolvable:$true] %s528_s11 }
  0x20   : > { %vm181_vm1 = vcmp.eq.s32.totalorder %v178_v4, %v179_v6  ;;  %vm180_vm2 = vcmp.eq.s32.totalorder %v177_v1, %v179_v6  ;;  %v221_v13 = vstv %s220_s18  ;;  %v288_v62 = vperm.slane %v287_v59, 1  ;;  %s530_s12 = scalar_lea.hbm %s529_s11, 4  ;;  %p535_p1 = scmp.lt.s32.totalorder %s529_s11, %s750_s4 }
  0x21   : > { %v423_v8 = vsel %vm181_vm1, 1.0, %v582_v7  ;;  %488 = vrcp.f32 %v221_v13  ;;  %v233_v17 = vand.u32 2147483648, %v221_v13  ;;  %vm227_vm5 = vweird.f32 %v221_v13  ;;  %p531_p12 = scmp.ne.s32.totalorder %s529_s11, %s530_s12  ;;  %p536_p2 = scmp.lt.s32.totalorder %s534_s14, %s530_s12 }
  0x22   : > { %425 = vmatpush.msk.msra.mxu0 %vm193_vm0, %v423_v8  ;;  %v231_v21 = vand.u32 2147483647, %v221_v13  ;;  %v298_v0 = vperm.slane %v297_v61, 1  ;;  %vm701_vm12 = vcmp.eq.s32.totalorder %v288_v62, 1  ;;  %v308_v8 = vperm.slane %v307_v2, 1 }
  0x23   : > { %484 = vset.pattern.permute.xlu1 %v584_v11  ;;  %v234_v24 = vor.u32 1.1754944e-38, %v233_v17  ;;  %v317_v11 = vsel %vm316_vm13, 1, %v585_v12  ;;  %vm326_vm15 = vcmp.eq.s32.totalorder %v676_v5, 4  ;;  %p532_p13 = pnand %p531_p12, %p654_p5  ;;  %p537_p3 = por %p536_p2, %p535_p1 }
  0x24   : > { %426 = vmatpush.msk.msra.mxu0 %vm180_vm2, %v583_v10  ;;  %262 = vperm.xlu1 %484, %v246_v3   ;;  %vm232_vm8 = vcmp.eq.f32.partialorder %v231_v21, 8.507059e+37  ;;  %vm299_vm14 = vcmp.eq.s32.totalorder %v298_v0, 1  ;;  %vm309_vm0 = vcmp.eq.s32.totalorder %v308_v8, 1 }
  0x25   : > { %427 = vmatmul.msk.f32.vlgmr.msra.gmra.mxu0 %vm189_vm3, %v188_v9  ;;  %486 = vset.pattern.permute.xlu2 %v587_v19  ;;  %p533_p0 = pneg %p532_p13 }
  0x26   : > { %276 = vperm.xlu2 %486, %v246_v3  }
  0x27   : > { %v489_v15 = vpop.eup %488  ;;  %p538_p4 = pnand %p537_p3, %p533_p0 }
  0x28   : > { %v223_v16 = vmul.f32 %v489_v15, %v221_v13  ;;  %vm228_vm6 = vweird.f32 %v489_v15 }
  0x29   : > { %vm229_vm7 = vmor %vm227_vm5, %vm228_vm6 }
  0x2a   : > { %v224_v20 = vsub.f32 1.0, %v223_v16 }
  0x2c   : > { %v225_v23 = vmul.f32 %v489_v15, %v224_v20 }
  0x2e   : > { %v226_v25 = vadd.f32 %v489_v15, %v225_v23 }
  0x30   : > { %v230_v26 = vsel %vm229_vm7, %v489_v15, %v226_v25 }
  0x31   : > { %v235_v27 = vsel %vm232_vm8, %v234_v24, %v230_v26 }
  0x32   : > { %433 = vpush %v235_v27 }
  0x63   : > { %s434_s23 = spop %433 }
  0x64   : > { %v241_v28 = vstv %s434_s23 }
  0x77   : > { %v270_v33 = vpop.permute.xlu2 %269 }
  0x80   : > { %v277_v45 = vpop.permute.xlu2 %276 }
  0x8d   : > { %v256_v31 = vpop.permute.xlu1 %255 }
  0x96   : > { %v263_v37 = vpop.permute.xlu1 %262 }
  0xa2   : > { %v214_v18 = vpop.f32.mrf.mxu0 }
  0xa3   : > { %v238_v22 = vsel %vm237_vm4, %v214_v18, 0.0 }
  0xa4   : > { %239 = vadd.xlane.f32.xlu0 %v238_v22 }
  0xb8   : > { %249 = vperm.xlu0 %482, %v246_v3  }
  0xc0   : > { %487 = vset.pattern.permute.xlu0 %v587_v19  ;;  %v327_v19 = vsel %vm326_vm15, 1, %v585_v12 }
  0xc1   : > { %v328_v22 = vperm.slane %v327_v19, 1 }
  0xc3   : > { %vm329_vm2 = vcmp.eq.s32.totalorder %v328_v22, 1 }
 0x117   : > { %v240_v29 = vpop.xlane.xlu0 %239 }
 0x118   : > { %v242_v30 = vmul.f32 %v241_v28, %v240_v29 }
 0x11a   : > { %v243_v32 = vsub.f32 %v214_v18, %v242_v30  ;;  %v318_v18 = vperm.slane %v317_v11, 1 }
 0x11c   : > { %v258_v34 = vperm.slane %v243_v32, 1  ;;  %v265_v35 = vperm.slane %v243_v32, 2  ;;  %v252_v36 = vperm.slane %v243_v32, 0  ;;  %v272_v39 = vperm.slane %v243_v32, 3 }
 0x11d   : > { %v279_v42 = vperm.slane %v243_v32, 4  ;;  %vm319_vm1 = vcmp.eq.s32.totalorder %v318_v18, 1 }
 0x11e   : > { %v259_v40 = vadd.f32 %v258_v34, %v256_v31  ;;  %v266_v43 = vadd.f32 %v265_v35, %v263_v37  ;;  %v273_v46 = vadd.f32 %v272_v39, %v270_v33 }
 0x11f   : > { %v684_v48 = vadd.f32 %v279_v42, %v277_v45 }
 0x120   : > { %v300_v14 = vsel %vm299_vm14, %v259_v40, 0.0  ;;  %v310_v21 = vsel %vm309_vm0, %v266_v43, 0.0  ;;  %v320_v24 = vsel %vm319_vm1, %v273_v46, 0.0 }
 0x121   : > { %v330_v12 = vsel %vm329_vm2, %v684_v48, 0.0 }
 0x12a   : > { %v250_v38 = vpop.permute.xlu0 %249 }
 0x12b   : > { %v253_v41 = vadd.f32 %v252_v36, %v250_v38 }
 0x12d   : > { %v260_v44 = vmax.f32 %v253_v41, %v259_v40  ;;  %v290_v9 = vsel %vm701_vm12, %v253_v41, 0.0 }
 0x12e   : > { %v301_v17 = vadd.f32 %v300_v14, %v290_v9 }
 0x12f   : > { %v267_v47 = vmax.f32 %v260_v44, %v266_v43 }
 0x130   : > { %v311_v23 = vadd.f32 %v310_v21, %v301_v17 }
 0x131   : > { %v274_v49 = vmax.f32 %v267_v47, %v273_v46 }
 0x132   : > { %v321_v5 = vadd.f32 %v320_v24, %v311_v23 }
 0x133   : > { %v687_v50 = vmax.f32 %v274_v49, %v684_v48 }
 0x134   : > { %v331_v27 = vadd.f32 %v330_v12, %v321_v5 }
 0x135   : > { %v282_v51 = vsub.f32 %v253_v41, %v687_v50  ;;  %v292_v52 = vsub.f32 %v259_v40, %v687_v50  ;;  %v302_v53 = vsub.f32 %v266_v43, %v687_v50  ;;  %v312_v54 = vsub.f32 %v273_v46, %v687_v50 }
 0x136   : > { %v322_v58 = vsub.f32 %v684_v48, %v687_v50 }
 0x137   : > { %v283_v55 = vmul.f32 1.442695, %v282_v51  ;;  %v293_v56 = vmul.f32 1.442695, %v292_v52  ;;  %v303_v57 = vmul.f32 1.442695, %v302_v53 }
 0x138   : > { %v313_v60 = vmul.f32 1.442695, %v312_v54  ;;  %v323_v63 = vmul.f32 1.442695, %v322_v58 }
 0x139   : > { %490 = vpow2.f32 %v283_v55 }
 0x13a   : > { %492 = vpow2.f32 %v293_v56 }
 0x13b   : > { %494 = vpow2.f32 %v303_v57 }
 0x13c   : > { %496 = vpow2.f32 %v313_v60 }
 0x13d   : > { %498 = vpow2.f32 %v323_v63 }
 0x13f   : > { %v491_v1 = vpop.eup %490 }
 0x140   : > { %v493_v3 = vpop.eup %492 }
 0x141   : > { %v295_v6 = vadd.f32 %v493_v3, %v491_v1  ;;  %v495_v7 = vpop.eup %494 }
 0x142   : > { %v497_v13 = vpop.eup %496 }
 0x143   : > { %v305_v10 = vadd.f32 %v495_v7, %v295_v6  ;;  %v499_v16 = vpop.eup %498 }
 0x145   : > { %v315_v15 = vadd.f32 %v497_v13, %v305_v10 }
 0x147   : > { %v325_v20 = vadd.f32 %v499_v16, %v315_v15 }
 0x149   : > { %500 = vlog2.f32 %v325_v20 }
 0x14f   : > { %v501_v25 = vpop.eup %500 }
 0x150   : > { %v333_v26 = vmul.f32 0.6931472, %v501_v25 }
 0x152   : > { %v334_v28 = vadd.f32 %v333_v26, %v687_v50 }
 0x154   : > { %v335_v29 = vsub.f32 %v331_v27, %v334_v28 }
 0x156   : > { %336 = vst [vmem:[%s170_s8] sm:$0xf] %v335_v29 }
 0x157   : > { %541 = shalt.err (!%p538_p4)
}
 0x158   : > { %435 = dma.vmem_to_hbm [thread:$0]  (%p654_p5), %s351_s9, 64, %s353_s10, %s338_s0  }
 0x159 PF: > { %p441_p7 = scmp.ge.s32.totalorder %s578_s22, 2  ;;  %s364_s17 = sand.u32 1, %s566_s19  }
 0x15a   : > { %s365_s18 = scalar_lea.sflag [#allocation5], %s364_s17 }
 0x15b   : > { %p438_p8 = pnand %p441_p7, %p658_p6 }
 0x15d   : > { %p439_p9 = pneg %p438_p8 }
 0x15f   : > { %561 = dma.done.wait (%p439_p9), %s365_s18, 64  }
 0x160   : > { %563 = vsyncadd (%p439_p9), %s365_s18, 4294967232  ;;  %p22_p10 = scmp.ge.s32.totalorder %s641_s24, 5   ;;  %s755_s19 = smov %s570_s20 }
 0x161   : > { %s756_s20 = smov %s574_s21  ;;  %s757_s21 = smov %s652_s27 }
 0x162   : > { %s758_s22 = smov %s641_s24  ;;  %24 = sbr.rel (!%p22_p10) target bundleno = 9 (0x9), region = 69 }
 0x167   :  { %371 = vsyncpa [#allocation5], 1 }
 0x168   :  { %373 = vsyncpa [#allocation5 + $0x1], 1 }

</bundles_post_ra>
